<compile_context>
chip_gen: v7x
topology: tpu7x:2x2x1
jax: 0.10.0
libtpu: 0.0.40
codegen_flags: <defaults>
</compile_context>

<pallas_src>
import jax
import jax.numpy as jnp
from jax import lax
from jax.experimental import pallas as pl
from jax.experimental.pallas import tpu as pltpu


def _make_sepconv_kernel(KH, KW, W, HW, Cin, bt):
    """Fused depthwise+pointwise kernel for static sizes (stride 1, valid)."""

    def kernel(x_ref, wf_ref, out_ref, patch_ref):
        # x_ref    : (bt, Cin, H*W)        NCHW-flat input tile (lane dim = H*W)
        # wf_ref   : (Cout, KH*KW*Cin)     fused depthwise*pointwise weight (pre-T)
        # out_ref  : (bt, Cout, H*W)       NCHW-flat padded output (valid window
        #                                  sliced off in the wrapper)
        # patch_ref: (KH*KW*Cin, bt*H*W)   f32 im2col scratch, lane-dense
        for i in range(bt):
            x = x_ref[i].astype(jnp.float32)                    # (Cin, H*W)
            for kh in range(KH):
                for kw in range(KW):
                    kk = kh * KW + kw
                    off = kh * W + kw
                    # Lane m of `shifted` holds x[:, m + off] (left-rotate by
                    # `off`).  Wrapped lanes (m >= HW - off) only ever feed
                    # output columns outside the valid (Ho, Wo) window, which
                    # the wrapper slices away -- every patch element is written,
                    # nothing stale is read.
                    # TODO(synk): pltpu.roll(x, HW - off, axis=1) is the single
                    # XLU-op form of this rotate; kept as an explicit static
                    # slice+concat for unambiguous semantics.
                    if off == 0:
                        shifted = x
                    else:
                        shifted = jnp.concatenate(
                            [x[:, off:], x[:, :off]], axis=1)
                    patch_ref[kk * Cin:(kk + 1) * Cin,
                              i * HW:(i + 1) * HW] = shifted

        # One fused MXU matmul, transposed formulation:
        #   (Cout, K) @ (K, bt*H*W) -> (Cout, bt*H*W)
        # The result is already in NCHW-flat, lane-dense layout.
        wf = wf_ref[...].astype(jnp.float32)                    # hoisted, once
        out = jnp.dot(wf, patch_ref[...],
                      preferred_element_type=jnp.float32)       # (Cout, bt*HW)

        for i in range(bt):
            out_ref[i] = out[:, i * HW:(i + 1) * HW].astype(out_ref.dtype)

    return kernel


def separable_conv2d(x_nchw, w_dw, w_pw, *, batch_tile=1):
    """Forward pass of SeperableConv2D.

    x_nchw : (B, Cin, H, W)    — PyTorch NCHW input
    w_dw   : (Cin, 1, KH, KW)  — torch depthwise conv weight (groups=Cin)
    w_pw   : (Cout, Cin, 1, 1) — torch pointwise (1x1) conv weight
    returns: (B, Cout, Ho, Wo) NCHW, Ho = H-KH+1, Wo = W-KW+1 (valid padding)

    batch_tile: images per grid step.  v7x (2 TCs): keep grid extent >= 2, i.e.
    batch_tile <= B//2 (or 1).  v5e/v6e (1 TC): batch_tile=B folds the whole
    batch into the matmul lane dimension and avoids per-step overhead.
    """
    B, Cin, H, W = x_nchw.shape
    Cout = w_pw.shape[0]
    KH, KW = w_dw.shape[2], w_dw.shape[3]
    Ho, Wo = H - KH + 1, W - KW + 1
    HW = H * W
    K = KH * KW * Cin
    bt = batch_tile
    assert B % bt == 0, "batch_tile must divide the batch"

    # Fused, PRE-TRANSPOSED weight:
    #   wf_t[co, (kh*KW+kw)*Cin + ci] = wd[ci,kh,kw] * wp[co,ci]
    wd_k = jnp.transpose(w_dw[:, 0, :, :].reshape(Cin, KH * KW), (1, 0))  # (KH*KW, Cin)
    wp_m = w_pw[:, :, 0, 0]                                               # (Cout, Cin)
    wf_t = (wp_m[:, None, :] * wd_k[None, :, :]).reshape(Cout, K)

    # NCHW stays NCHW: flattening H*W is a free, contiguous reshape (no
    # transpose, no extra HBM pass), and 256 lanes = 2 x 128 (fully unmasked).
    x_flat = x_nchw.reshape(B, Cin, HW)

    kernel = _make_sepconv_kernel(KH, KW, W, HW, Cin, bt)

    itemsize = jnp.dtype(x_nchw.dtype).itemsize
    cost = pl.CostEstimate(
        flops=2 * B * Ho * Wo * KH * KW * Cin * Cout,
        transcendentals=0,
        bytes_accessed=(B * Cin * HW) * itemsize
        + Cout * K * 4
        + (B * Cout * HW) * itemsize,
    )

    out_flat = pl.pallas_call(
        kernel,
        out_shape=jax.ShapeDtypeStruct((B, Cout, HW), x_nchw.dtype),
        grid_spec=pltpu.PrefetchScalarGridSpec(
            num_scalar_prefetch=0,
            grid=(B // bt,),
            in_specs=[
                pl.BlockSpec((bt, Cin, HW), lambda b: (b, 0, 0)),
                pl.BlockSpec((Cout, K), lambda b: (0, 0)),
            ],
            out_specs=pl.BlockSpec((bt, Cout, HW), lambda b: (b, 0, 0)),
            scratch_shapes=[
                # im2col scratch replicates the activation KH*KW times; at
                # production H/W on v7x (64 MiB VMEM) tile Ho into row strips
                # with a (KH-1)-row halo or use bf16 patches.
                pltpu.VMEM((K, bt * HW), jnp.float32),
            ],
        ),
        compiler_params=pltpu.CompilerParams(
            dimension_semantics=("parallel",),
            vmem_limit_bytes=32 * 1024 * 1024),
        cost_estimate=cost,
    )(x_flat, wf_t)

    # Free reshape + slice of the valid window (kernel writes the padded
    # (H, W)-wide columns so every in-kernel store is lane-dense and unmasked).
    return out_flat.reshape(B, Cout, H, W)[:, :, :Ho, :Wo]


def _reference(x_nchw, w_dw, w_pw):
    """Pure-JAX reference matching nn.Conv2d semantics (groups=Cin then 1x1)."""
    Cin = x_nchw.shape[1]
    dn = lax.conv_dimension_numbers(x_nchw.shape, w_dw.shape,
                                    ("NCHW", "OIHW", "NCHW"))
    y = lax.conv_general_dilated(
        x_nchw, w_dw, window_strides=(1, 1), padding="VALID",
        dimension_numbers=dn, feature_group_count=Cin)
    dn2 = lax.conv_dimension_numbers(y.shape, w_pw.shape,
                                     ("NCHW", "OIHW", "NCHW"))
    return lax.conv_general_dilated(
        y, w_pw, window_strides=(1, 1), padding="VALID",
        dimension_numbers=dn2)


if __name__ == "__main__":
    # Small shapes consistent with the module: B=2, Cin=4, Cout=8, H=W=16, k=3.
    B, Cin, Cout, H, W, Kk = 2, 4, 8, 16, 16, 3

    key = jax.random.PRNGKey(0)
    kx, kdw, kpw = jax.random.split(key, 3)

    x = jax.random.normal(kx, (B, Cin, H, W), dtype=jnp.float32)
    # Deterministic synthetic weights matching nn.Conv2d parameter shapes.
    w_dw = jax.random.normal(kdw, (Cin, 1, Kk, Kk), dtype=jnp.float32) * 0.1
    w_pw = jax.random.normal(kpw, (Cout, Cin, 1, 1), dtype=jnp.float32) * 0.1

    # batch_tile=1 keeps a parallel grid of extent 2 (both v7x cores busy);
    # on single-TC v5e/v6e use batch_tile=B to fold the batch into the matmul.
    out = jax.block_until_ready(separable_conv2d(x, w_dw, w_pw, batch_tile=1))
    ref = jax.block_until_ready(_reference(x, w_dw, w_pw))

    assert out.shape == (B, Cout, H - Kk + 1, W - Kk + 1), out.shape
    # Single fused K=36 f32 contraction on the MXU; tolerance reflects the
    # reassociation only (would need re-baselining if bf16 operands are used).
    assert jnp.allclose(out, ref, atol=5e-4, rtol=5e-4), \
        float(jnp.max(jnp.abs(out - ref)))

    print("KERNEL_OK")
</pallas_src>

<mosaic_0001>
module attributes {stable_mosaic.version = 11 : i64} {
  func.func @kernel(%arg0: i32, %arg1: memref<1x4x256xf32, #tpu.memory_space<vmem>>, %arg2: memref<8x36xf32, #tpu.memory_space<vmem>>, %arg3: memref<1x8x256xf32, #tpu.memory_space<vmem>>, %arg4: memref<36x256xf32, #tpu.memory_space<vmem>>) attributes {dimension_semantics = [#tpu.dimension_semantics<parallel>], iteration_bounds = array<i64: 2>, scalar_prefetch = 0 : i64, scratch_operands = 1 : i64, tpu.core_type = #tpu.core_type<tc>, window_params = [{transform_indices = @transform_0, window_bounds = array<i64: 1, 4, 256>}, {pipeline_mode = #tpu.pipeline_mode<synchronous>, transform_indices = @transform_1, window_bounds = array<i64: 8, 36>}, {transform_indices = @transform_2, window_bounds = array<i64: 1, 8, 256>}]} {
    %c0 = arith.constant 0 : index
    %c0_0 = arith.constant 0 : index
    %c0_1 = arith.constant 0 : index
    %0 = vector.load %arg1[%c0, %c0_0, %c0_1] : memref<1x4x256xf32, #tpu.memory_space<vmem>>, vector<1x4x256xf32>
    %1 = vector.shape_cast %0 : vector<1x4x256xf32> to vector<4x256xf32>
    %c0_2 = arith.constant 0 : index
    %c0_3 = arith.constant 0 : index
    %2 = vector.load %arg4[%c0_2, %c0_3] : memref<36x256xf32, #tpu.memory_space<vmem>>, vector<4x256xf32>
    tpu.vector_store %arg4[%c0_2, %c0_3], %1 {strides = array<i32>} : memref<36x256xf32, #tpu.memory_space<vmem>>, vector<4x256xf32>,
    %3 = vector.extract_strided_slice %1 {offsets = [0, 1], sizes = [4, 255], strides = [1, 1]} : vector<4x256xf32> to vector<4x255xf32>
    %4 = vector.extract_strided_slice %1 {offsets = [0, 0], sizes = [4, 1], strides = [1, 1]} : vector<4x256xf32> to vector<4x1xf32>
    %5 = tpu.concatenate %3, %4 in 1 : vector<4x255xf32>, vector<4x1xf32> -> vector<4x256xf32>
    %c4 = arith.constant 4 : index
    %c0_4 = arith.constant 0 : index
    %6 = vector.load %arg4[%c4, %c0_4] : memref<36x256xf32, #tpu.memory_space<vmem>>, vector<4x256xf32>
    tpu.vector_store %arg4[%c4, %c0_4], %5 {strides = array<i32>} : memref<36x256xf32, #tpu.memory_space<vmem>>, vector<4x256xf32>,
    %7 = vector.extract_strided_slice %1 {offsets = [0, 2], sizes = [4, 254], strides = [1, 1]} : vector<4x256xf32> to vector<4x254xf32>
    %8 = vector.extract_strided_slice %1 {offsets = [0, 0], sizes = [4, 2], strides = [1, 1]} : vector<4x256xf32> to vector<4x2xf32>
    %9 = tpu.concatenate %7, %8 in 1 : vector<4x254xf32>, vector<4x2xf32> -> vector<4x256xf32>
    %c8 = arith.constant 8 : index
    %c0_5 = arith.constant 0 : index
    %10 = vector.load %arg4[%c8, %c0_5] : memref<36x256xf32, #tpu.memory_space<vmem>>, vector<4x256xf32>
    tpu.vector_store %arg4[%c8, %c0_5], %9 {strides = array<i32>} : memref<36x256xf32, #tpu.memory_space<vmem>>, vector<4x256xf32>,
    %11 = vector.extract_strided_slice %1 {offsets = [0, 16], sizes = [4, 240], strides = [1, 1]} : vector<4x256xf32> to vector<4x240xf32>
    %12 = vector.extract_strided_slice %1 {offsets = [0, 0], sizes = [4, 16], strides = [1, 1]} : vector<4x256xf32> to vector<4x16xf32>
    %13 = tpu.concatenate %11, %12 in 1 : vector<4x240xf32>, vector<4x16xf32> -> vector<4x256xf32>
    %c12 = arith.constant 12 : index
    %c0_6 = arith.constant 0 : index
    %14 = vector.load %arg4[%c12, %c0_6] : memref<36x256xf32, #tpu.memory_space<vmem>>, vector<4x256xf32>
    tpu.vector_store %arg4[%c12, %c0_6], %13 {strides = array<i32>} : memref<36x256xf32, #tpu.memory_space<vmem>>, vector<4x256xf32>,
    %15 = vector.extract_strided_slice %1 {offsets = [0, 17], sizes = [4, 239], strides = [1, 1]} : vector<4x256xf32> to vector<4x239xf32>
    %16 = vector.extract_strided_slice %1 {offsets = [0, 0], sizes = [4, 17], strides = [1, 1]} : vector<4x256xf32> to vector<4x17xf32>
    %17 = tpu.concatenate %15, %16 in 1 : vector<4x239xf32>, vector<4x17xf32> -> vector<4x256xf32>
    %c16 = arith.constant 16 : index
    %c0_7 = arith.constant 0 : index
    %18 = vector.load %arg4[%c16, %c0_7] : memref<36x256xf32, #tpu.memory_space<vmem>>, vector<4x256xf32>
    tpu.vector_store %arg4[%c16, %c0_7], %17 {strides = array<i32>} : memref<36x256xf32, #tpu.memory_space<vmem>>, vector<4x256xf32>,
    %19 = vector.extract_strided_slice %1 {offsets = [0, 18], sizes = [4, 238], strides = [1, 1]} : vector<4x256xf32> to vector<4x238xf32>
    %20 = vector.extract_strided_slice %1 {offsets = [0, 0], sizes = [4, 18], strides = [1, 1]} : vector<4x256xf32> to vector<4x18xf32>
    %21 = tpu.concatenate %19, %20 in 1 : vector<4x238xf32>, vector<4x18xf32> -> vector<4x256xf32>
    %c20 = arith.constant 20 : index
    %c0_8 = arith.constant 0 : index
    %22 = vector.load %arg4[%c20, %c0_8] : memref<36x256xf32, #tpu.memory_space<vmem>>, vector<4x256xf32>
    tpu.vector_store %arg4[%c20, %c0_8], %21 {strides = array<i32>} : memref<36x256xf32, #tpu.memory_space<vmem>>, vector<4x256xf32>,
    %23 = vector.extract_strided_slice %1 {offsets = [0, 32], sizes = [4, 224], strides = [1, 1]} : vector<4x256xf32> to vector<4x224xf32>
    %24 = vector.extract_strided_slice %1 {offsets = [0, 0], sizes = [4, 32], strides = [1, 1]} : vector<4x256xf32> to vector<4x32xf32>
    %25 = tpu.concatenate %23, %24 in 1 : vector<4x224xf32>, vector<4x32xf32> -> vector<4x256xf32>
    %c24 = arith.constant 24 : index
    %c0_9 = arith.constant 0 : index
    %26 = vector.load %arg4[%c24, %c0_9] : memref<36x256xf32, #tpu.memory_space<vmem>>, vector<4x256xf32>
    tpu.vector_store %arg4[%c24, %c0_9], %25 {strides = array<i32>} : memref<36x256xf32, #tpu.memory_space<vmem>>, vector<4x256xf32>,
    %27 = vector.extract_strided_slice %1 {offsets = [0, 33], sizes = [4, 223], strides = [1, 1]} : vector<4x256xf32> to vector<4x223xf32>
    %28 = vector.extract_strided_slice %1 {offsets = [0, 0], sizes = [4, 33], strides = [1, 1]} : vector<4x256xf32> to vector<4x33xf32>
    %29 = tpu.concatenate %27, %28 in 1 : vector<4x223xf32>, vector<4x33xf32> -> vector<4x256xf32>
    %c28 = arith.constant 28 : index
    %c0_10 = arith.constant 0 : index
    %30 = vector.load %arg4[%c28, %c0_10] : memref<36x256xf32, #tpu.memory_space<vmem>>, vector<4x256xf32>
    tpu.vector_store %arg4[%c28, %c0_10], %29 {strides = array<i32>} : memref<36x256xf32, #tpu.memory_space<vmem>>, vector<4x256xf32>,
    %31 = vector.extract_strided_slice %1 {offsets = [0, 34], sizes = [4, 222], strides = [1, 1]} : vector<4x256xf32> to vector<4x222xf32>
    %32 = vector.extract_strided_slice %1 {offsets = [0, 0], sizes = [4, 34], strides = [1, 1]} : vector<4x256xf32> to vector<4x34xf32>
    %33 = tpu.concatenate %31, %32 in 1 : vector<4x222xf32>, vector<4x34xf32> -> vector<4x256xf32>
    %c32 = arith.constant 32 : index
    %c0_11 = arith.constant 0 : index
    %34 = vector.load %arg4[%c32, %c0_11] : memref<36x256xf32, #tpu.memory_space<vmem>>, vector<4x256xf32>
    tpu.vector_store %arg4[%c32, %c0_11], %33 {strides = array<i32>} : memref<36x256xf32, #tpu.memory_space<vmem>>, vector<4x256xf32>,
    %c0_12 = arith.constant 0 : index
    %c0_13 = arith.constant 0 : index
    %35 = vector.load %arg2[%c0_12, %c0_13] : memref<8x36xf32, #tpu.memory_space<vmem>>, vector<8x36xf32>
    %c0_14 = arith.constant 0 : index
    %c0_15 = arith.constant 0 : index
    %36 = vector.load %arg4[%c0_14, %c0_15] : memref<36x256xf32, #tpu.memory_space<vmem>>, vector<36x256xf32>
    %cst = arith.constant dense<0.000000e+00> : vector<8x256xf32>
    %37 = tpu.matmul %35, %36, %cst {dimension_numbers = #tpu.dot_dimension_numbers<[1], [0], [0], [1], [0, 0, 1, 1], [], []>} : vector<8x36xf32>, vector<36x256xf32>, vector<8x256xf32> -> vector<8x256xf32>
    %c0_16 = arith.constant 0 : index
    %c0_17 = arith.constant 0 : index
    %c0_18 = arith.constant 0 : index
    %38 = vector.load %arg3[%c0_16, %c0_17, %c0_18] : memref<1x8x256xf32, #tpu.memory_space<vmem>>, vector<1x8x256xf32>
    %39 = vector.shape_cast %38 : vector<1x8x256xf32> to vector<8x256xf32>
    %40 = vector.shape_cast %37 : vector<8x256xf32> to vector<1x8x256xf32>
    tpu.vector_store %arg3[%c0_16, %c0_17, %c0_18], %40 {strides = array<i32>} : memref<1x8x256xf32, #tpu.memory_space<vmem>>, vector<1x8x256xf32>,
    return
  }
  func.func @transform_0(%arg0: i32) -> (i32, i32, i32) {
    %c0_i32 = arith.constant 0 : i32
    %c0_i32_0 = arith.constant 0 : i32
    %c0_i32_1 = arith.constant 0 : i32
    return %arg0, %c0_i32, %c0_i32_0 : i32, i32, i32
  }
  func.func @transform_1(%arg0: i32) -> (i32, i32) {
    %c0_i32 = arith.constant 0 : i32
    %c0_i32_0 = arith.constant 0 : i32
    %c0_i32_1 = arith.constant 0 : i32
    return %c0_i32, %c0_i32_0 : i32, i32
  }
  func.func @transform_2(%arg0: i32) -> (i32, i32, i32) {
    %c0_i32 = arith.constant 0 : i32
    %c0_i32_0 = arith.constant 0 : i32
    %c0_i32_1 = arith.constant 0 : i32
    return %arg0, %c0_i32, %c0_i32_0 : i32, i32, i32
  }
}

</mosaic_0001>

<bundles_post_ra>
// kernel: tpu_custom_call.1
= control target key start
LH: loop header
LB: loop body
LE: loop exit
PB: predicated region body
PF: predicated region fallthrough
CT: control target
= control target key end

     0   :  { %7 = vsyncpa [#allocation4], 0  ;;  %s936_s0 = inlined_call_operand.hbm [shape: f32[2,4,256], index: 0, kind: input, shape index: {}]   ;;  %s937_s1 = inlined_call_operand.hbm [shape: f32[8,36], index: 1, kind: input, shape index: {}]   ;;  %s938_s2 = inlined_call_operand.hbm [shape: f32[2,8,256], index: 2, kind: output, shape index: {}]  }
   0x1   :  { %9 = vsyncpa [#allocation4 + $0x1], 0 }
   0x2   :  { %10 = vsyncpa [#allocation7], 0 }
   0x3   :  { %11 = vsyncpa [#allocation5], 0 }
   0x4   :  { %13 = vsyncpa [#allocation5 + $0x1], 0  ;;  %s734_s9 = smov 0   ;;  %s736_s10 = smov 0  }
   0x5   :  { %s738_s11 = smov 0   ;;  %s740_s12 = smov 0  }
   0x6 LB: > { %s755_s13 = sadd.s32 4294967295, %s705_s12   ;;  %s481_s14 = sadd.s32 4294967294, %s705_s12   ;;  %s705_s12 = sphi %s740_s12, %s962_s12   ;;  %s701_s11 = sphi %s738_s11, %s961_s11   ;;  %s697_s10 = sphi %s736_s10, %s960_s10   ;;  %s693_s9 = sphi %s734_s9, %s959_s9  }
   0x7   : > { %p39_p0 = scmp.ne.s32.totalorder %s697_s10, %s693_s9  ;;  %p939_p1 = scmp.eq.s32.totalorder %s755_s13, 0 }
   0x8   : > { %p90_p3 = scmp.eq.s32.totalorder %s481_s14, 1  ;;  %p482_p5 = scmp.ge.s32.totalorder %s705_s12, 1 }
   0x9   : > { %p764_p4 = por %p939_p1, %p39_p0  ;;  %p97_p7 = scmp.lt.s32.totalorder %s705_s12, 3 }
   0xa   : > { %p769_p6 = por %p90_p3, %p39_p0  ;;  %s707_s18 = smov [#allocation6]  }
   0xb   : > { %s942_s15 = scalar_select %p764_p4, 1, 0 }
   0xc   : > { %s943_s16 = scalar_select %p769_p6, 1, 0 }
   0xd   : > { %p774_p8 = pnand %p482_p5, %p97_p7  ;;  %s110_s19 = sshll.u32 %s707_s18, 4  ;;  %s111_s19 = int_to_ptr.vmem [resolvable:$true] %s110_s19 }
   0xe   : > { %s782_s20 = sadd.s32 1, %s705_s12   ;;  %s26_s24 = sadd.s32 1, %s701_s11 }
   0xf   : > { %s944_s17 = scalar_select %p774_p8, 1, 0 }
  0x10   : > { %p518_p10 = pneg %p774_p8  ;;  %s23_s22 = ssub.s32 %s705_s12, %s782_s20 }
  0x11   : > { %p792_p12 = scmp.eq.s32.totalorder %s23_s22, 0  ;;  %s577_s27 = scalar_lea.hbm %s937_s1, 128 }
  0x12   : > { %p786_p11 = pnand %p518_p10, %p939_p1  ;;  %p578_p0 = scmp.ne.s32.totalorder %s937_s1, %s577_s27 }
  0x13   : > { %s946_s23 = scalar_select %p792_p12, 1, 0 }
  0x14   : > { %p579_p3 = pneg %p786_p11  ;;  %p584_p10 = scmp.lt.u32.totalorder %s577_s27, %s937_s1 }
  0x16   : > { %p580_p5 = pnand %p579_p3, %p578_p0 }
  0x18   : > { %p581_p7 = pneg %p580_p5 }
  0x1a   : > { %p586_p9 = pnand %p584_p10, %p581_p7 }
  0x1c   : > { %589 = shalt.err (!%p586_p9)
}
  0x1d   : > { %s590_s4 = scalar_lea.vmem %s111_s19, 128  ;;  %p598_p6 = scmp.lt.s32.totalorder %s111_s19, %s111_s19 }
  0x1e   : > { %p591_p1 = scmp.ne.s32.totalorder %s111_s19, %s590_s4  ;;  %p599_p4 = scmp.lt.s32.totalorder %s590_s4, %s590_s4 }
  0x20   : > { %p593_p2 = pnand %p591_p1, %p579_p3  ;;  %p600_p8 = por %p599_p4, %p598_p6 }
  0x22   : > { %p594_p13 = pneg %p593_p2 }
  0x24   : > { %p601_p12 = pnand %p600_p8, %p594_p13 }
  0x26   : > { %604 = shalt.err (!%p601_p12)
}
  0x27   : > { %521 = dma.hbm_to_vmem [thread:$0]  (!%p786_p11), %s937_s1, 128, %s111_s19, [#allocation7]  }
  0x28   : > { %p947_p1 = scmp.ne.s32.totalorder %s946_s23, 0  ;;  %p34_p2 = scmp.eq.s32.totalorder %s705_s12, 0 }
  0x29   : > { %p948_p4 = scmp.ne.s32.totalorder %s701_s11, %s697_s10  ;;  %p949_p6 = scmp.eq.s32.totalorder %s755_s13, 1 }
  0x2a   : > { %s818_s7 = scalar_select %p947_p1, %s701_s11, %s26_s24  }
  0x2b   : > { %p826_p8 = por %p949_p6, %p948_p4  ;;  %p531_p9 = scmp.lt.s32.totalorder %s705_s12, 2 }
  0x2c   : > { %s121_s14 = sand.u32 1, %s701_s11   ;;  %p951_p12 = pmov %p948_p4 }
  0x2d   : > { %s485_s18 = sshll.u32 %s121_s14, 3  ;;  %s500_s21 = sshll.u32 %s705_s12, 7 }
  0x2e   : > { %p35_p13 = por %p34_p2, %p951_p12  ;;  %s839_s19 = scalar_lea.hbm %s936_s0, %s500_s21 }
  0x2f   : > { %s125_s23 = scalar_lea.vmem [#allocation3], %s485_s18  ;;  %s122_s27 = scalar_lea.sflag [#allocation4], %s121_s14 }
  0x30   : > { %s133_s24 = sshll.u32 %s125_s23, 4  ;;  %p841_p11 = pnand %p531_p9, %p35_p13  ;;  %s845_s24 = int_to_ptr.vmem [resolvable:$true] %s133_s24 }
  0x31   : > { %s605_s28 = scalar_lea.hbm %s839_s19, 128  ;;  %s610_s3 = scalar_lea.hbm %s936_s0, 256 }
  0x32   : > { %p606_p0 = scmp.ne.s32.totalorder %s839_s19, %s605_s28  ;;  %p607_p3 = pneg %p841_p11 }
  0x33   : > { %p611_p10 = scmp.lt.u32.totalorder %s839_s19, %s936_s0  ;;  %p612_p1 = scmp.lt.u32.totalorder %s610_s3, %s605_s28 }
  0x34   : > { %p608_p5 = pnand %p607_p3, %p606_p0  ;;  %p614_p4 = scmp.lt.u32.totalorder %s605_s28, %s839_s19 }
  0x35   : > { %p613_p2 = por %p612_p1, %p611_p10 }
  0x36   : > { %p609_p7 = pneg %p608_p5 }
  0x37   : > { %p615_p6 = por %p614_p4, %p613_p2 }
  0x39   : > { %p616_p9 = pnand %p615_p6, %p609_p7 }
  0x3b   : > { %619 = shalt.err (!%p616_p9)
}
  0x3c   : > { %s620_s6 = scalar_lea.vmem %s845_s24, 128  ;;  %s708_s14 = smov [#allocation3]  }
  0x3d   : > { %p621_p12 = scmp.ne.s32.totalorder %s845_s24, %s620_s6  ;;  %s625_s18 = sshll.u32 %s708_s14, 4  ;;  %s626_s18 = int_to_ptr.vmem [resolvable:$false] %s625_s18 }
  0x3e   : > { %s627_s21 = scalar_lea.vmem %s626_s18, 256  ;;  %p628_p5 = scmp.lt.s32.totalorder %s845_s24, %s626_s18 }
  0x3f   : > { %p623_p13 = pnand %p621_p12, %p607_p3  ;;  %p629_p10 = scmp.lt.s32.totalorder %s627_s21, %s620_s6 }
  0x41   : > { %p624_p0 = pneg %p623_p13  ;;  %p630_p1 = por %p629_p10, %p628_p5 }
  0x43   : > { %p631_p2 = pnand %p630_p1, %p624_p0 }
  0x45   : > { %634 = shalt.err (!%p631_p2)
}
  0x46   : > { %525 = dma.hbm_to_vmem [thread:$0]  (!%p841_p11), %s839_s19, 128, %s845_s24, %s122_s27  }
  0x47   : > { %p953_p7 = scmp.ne.s32.totalorder %s944_s17, 0 }
  0x48   : > { %s875_s22 = sand.u32 (!%p953_p7), 1, %s697_s10   ;;  %p954_p3 = scmp.ne.s32.totalorder (!%p953_p7), %s942_s15, 0 }
  0x49   : > { %142 = sbr.rel (%p953_p7) target bundleno = 468 (0x1d4), region = 28  ;;  %s489_s25 = sshll.u32 (!%p953_p7), %s875_s22, 3 }
  0x4a   : > { %s145_s23 = scalar_lea.sflag (!%p953_p7), [#allocation4], %s875_s22  ;;  %s148_s28 = scalar_lea.vmem (!%p953_p7), [#allocation3], %s489_s25 }
  0x50   : > { %680 = dma.done.wait (%p954_p3), %s145_s23, 128  }
  0x51   : > { %682 = vsyncadd (%p954_p3), %s145_s23, 4294967168  ;;  %p955_p4 = scmp.eq.s32.totalorder %s755_s13, 0 }
  0x53   : > { %684 = dma.done.wait (%p955_p4), [#allocation7], 128   ;;  %p956_p11 = pmov %p955_p4 }
  0x54   : > { %v173_v0 = vld [vmem:[%s148_s28] sm:$0xff]  ;;  %s709_s17 = smov 112   ;;  %s710_s19 = smov 127   ;;  %v716_v2 = vmov 0.0   ;;  %vm211_vm0 = vcmask 916480   ;;  %vm199_vm1 = vcmask 1031168  }
  0x55   : > { %686 = vsyncadd (%p956_p11), [#allocation7], 4294967168  ;;  %207 = vrot.lane.b32.xlu1 %v173_v0, %s709_s17  ;;  %177 = vst [vmem:[#allocation2] sm:$0xf] %v173_v0  ;;  %179 = vrot.lane.b32.xlu0 %v173_v0, %s710_s19  ;;  %v175_v1 = vcombine.high %v173_v0, %v173_v0  ;;  %s711_s24 = smov 126   ;;  %s712_s15 = smov 110  }
  0x56   : > { %s713_s26 = smov 95   ;;  %s714_s27 = smov 111   ;;  %377 = vmatprep.mubr.f32.mxu0 %v716_v2  ;;  %vm183_vm2 = vcmask 1039360   ;;  %vm239_vm3 = vcmask 900096   ;;  %vm267_vm4 = vcmask 777216   ;;  %vm227_vm5 = vcmask 908288  }
  0x57   : > { %178 = vst [vmem:[#allocation2 + $0x8] sm:$0xf] %v175_v1  ;;  %s715_s29 = smov 96   ;;  %s717_s30 = smov 94   ;;  %vm255_vm6 = vcmask 785408   ;;  %vm283_vm7 = vcmask 769024  }
  0x58   : > { %vm306_vm8 = vcmask 1043456   ;;  %v291_v57 = vld [vmem:[#allocation6] sm:$0xff]  ;;  %vm302_vm9 = vcmask 293888   ;;  %s491_s3 = sshll.u32 %s875_s22, 4  ;;  %s501_s6 = sshll.u32 %s755_s13, 8 }
  0x59   : > { %195 = vrot.lane.b32.xlu0 %v173_v0, %s711_s24  ;;  %209 = vrot.lane.b32.xlu1 %v175_v1, %s709_s17  ;;  %s172_s4 = scalar_lea.vmem [#allocation8], %s491_s3  ;;  %s894_s21 = scalar_lea.hbm %s938_s2, %s501_s6 }
  0x5a   : > { %s401_s5 = sshll.u32 %s172_s4, 4  ;;  %s387_s25 = scalar_lea.sflag [#allocation5], %s875_s22  ;;  %s889_s5 = int_to_ptr.vmem [resolvable:$true] %s401_s5 }
  0x5b   : > { %s635_s23 = scalar_lea.vmem %s889_s5, 256  ;;  %s718_s13 = smov [#allocation8]  }
  0x5c   : > { %p636_p6 = scmp.ne.s32.totalorder %s889_s5, %s635_s23  ;;  %s639_s28 = sshll.u32 %s718_s13, 4  ;;  %s640_s28 = int_to_ptr.vmem [resolvable:$false] %s639_s28 }
  0x5d   : > { %197 = vrot.lane.b32.xlu1 %v175_v1, %s711_s24  ;;  %181 = vrot.lane.b32.xlu0 %v175_v1, %s710_s19  ;;  %s641_s17 = scalar_lea.vmem %s640_s28, 512  ;;  %p642_p13 = scmp.lt.s32.totalorder %s889_s5, %s640_s28 }
  0x5e   : > { %p637_p9 = pnand %p636_p6, %p826_p8  ;;  %p643_p0 = scmp.lt.s32.totalorder %s641_s17, %s635_s23 }
  0x60   : > { %p638_p12 = pneg %p637_p9  ;;  %p644_p5 = por %p643_p0, %p642_p13 }
  0x61   : > { %237 = vrot.lane.b32.xlu1 %v175_v1, %s712_s15  ;;  %235 = vrot.lane.b32.xlu0 %v173_v0, %s712_s15 }
  0x62   : > { %p645_p10 = pnand %p644_p5, %p638_p12 }
  0x65   : > { %265 = vrot.lane.b32.xlu1 %v175_v1, %s713_s26  ;;  %263 = vrot.lane.b32.xlu0 %v173_v0, %s713_s26 }
  0x69   : > { %225 = vrot.lane.b32.xlu1 %v175_v1, %s714_s27  ;;  %223 = vrot.lane.b32.xlu0 %v173_v0, %s714_s27 }
  0x6d   : > { %253 = vrot.lane.b32.xlu1 %v175_v1, %s715_s29  ;;  %251 = vrot.lane.b32.xlu0 %v173_v0, %s715_s29 }
  0x71   : > { %281 = vrot.lane.b32.xlu1 %v175_v1, %s717_s30  ;;  %279 = vrot.lane.b32.xlu0 %v173_v0, %s717_s30 }
  0xc7   : > { %v208_v3 = vpop.permute.xlu1 %207  ;;  %v180_v4 = vpop.permute.xlu0 %179 }
  0xcb   : > { %v196_v5 = vpop.permute.xlu0 %195  ;;  %v210_v6 = vpop.permute.xlu1 %209 }
  0xcc   : > { %v212_v7 = vsel %vm211_vm0, %v208_v3, %v210_v6  ;;  %v215_v8 = vsel %vm211_vm0, %v210_v6, %v208_v3 }
  0xcd   : > { %v217_v9 = vrot.slane %v212_v7, 4  ;;  %v218_v10 = vrot.slane %v215_v8, 4 }
  0xcf   : > { %221 = vst [vmem:[#allocation2 + $0x10] sm:$0xf0] %v217_v9  ;;  %222 = vst [vmem:[#allocation2 + $0x18] sm:$0xf0] %v218_v10  ;;  %v198_v11 = vpop.permute.xlu1 %197  ;;  %v182_v12 = vpop.permute.xlu0 %181 }
  0xd0   : > { %v200_v13 = vsel %vm199_vm1, %v196_v5, %v198_v11  ;;  %v204_v14 = vsel %vm199_vm1, %v198_v11, %v196_v5  ;;  %v184_v15 = vsel %vm183_vm2, %v180_v4, %v182_v12  ;;  %v187_v16 = vsel %vm183_vm2, %v182_v12, %v180_v4 }
  0xd1   : > { %205 = vst [vmem:[#allocation2 + $0x10] sm:$0xf] %v200_v13  ;;  %206 = vst [vmem:[#allocation2 + $0x18] sm:$0xf] %v204_v14  ;;  %v189_v17 = vrot.slane %v184_v15, 4  ;;  %v190_v18 = vrot.slane %v187_v16, 4 }
  0xd3   : > { %193 = vst [vmem:[#allocation2] sm:$0xf0] %v189_v17  ;;  %194 = vst [vmem:[#allocation2 + $0x8] sm:$0xf0] %v190_v18  ;;  %v238_v19 = vpop.permute.xlu1 %237  ;;  %v236_v20 = vpop.permute.xlu0 %235 }
  0xd4   : > { %v240_v21 = vsel %vm239_vm3, %v236_v20, %v238_v19  ;;  %v243_v22 = vsel %vm239_vm3, %v238_v19, %v236_v20 }
  0xd5   : > { %v245_v23 = vrot.slane %v240_v21, 4  ;;  %v246_v24 = vrot.slane %v243_v22, 4 }
  0xd7   : > { %249 = vst [vmem:[#allocation2 + $0x20] sm:$0xf0] %v245_v23  ;;  %250 = vst [vmem:[#allocation2 + $0x28] sm:$0xf0] %v246_v24  ;;  %v266_v25 = vpop.permute.xlu1 %265  ;;  %v264_v26 = vpop.permute.xlu0 %263 }
  0xd8   : > { %v268_v27 = vsel %vm267_vm4, %v264_v26, %v266_v25  ;;  %v271_v28 = vsel %vm267_vm4, %v266_v25, %v264_v26  ;;  %v295_v31 = vld [vmem:[#allocation2 + $0x18] sm:$0xff]  ;;  %v294_v34 = vld [vmem:[#allocation2 + $0x10] sm:$0xff] }
  0xd9   : > { %v273_v29 = vrot.slane %v268_v27, 4  ;;  %v274_v30 = vrot.slane %v271_v28, 4 }
  0xda   : > { %v293_v32 = vld [vmem:[#allocation2 + $0x8] sm:$0xff]  ;;  %v292_v33 = vld [vmem:[#allocation2] sm:$0xff] }
  0xdb   : > { %277 = vst [vmem:[#allocation2 + $0x30] sm:$0xf0] %v273_v29  ;;  %278 = vst [vmem:[#allocation2 + $0x38] sm:$0xf0] %v274_v30  ;;  %v226_v35 = vpop.permute.xlu1 %225  ;;  %v224_v36 = vpop.permute.xlu0 %223  ;;  %v502_v37 = vpack.c.bf16 %v295_v31, %v293_v32  ;;  %v504_v38 = vpack.c.bf16 %v294_v34, %v292_v33 }
  0xdc   : > { %v228_v39 = vsel %vm227_vm5, %v224_v36, %v226_v35  ;;  %v232_v40 = vsel %vm227_vm5, %v226_v35, %v224_v36 }
  0xdd   : > { %233 = vst [vmem:[#allocation2 + $0x20] sm:$0xf] %v228_v39  ;;  %234 = vst [vmem:[#allocation2 + $0x28] sm:$0xf] %v232_v40  ;;  %503 = vmatprep.subr.bf16.mxu0 %v502_v37 }
  0xde   : > { %505 = vmatpush1.bf16.msra.mxu0 %v504_v38 }
  0xdf   : > { %v254_v41 = vpop.permute.xlu1 %253  ;;  %v252_v42 = vpop.permute.xlu0 %251 }
  0xe0   : > { %v256_v43 = vsel %vm255_vm6, %v252_v42, %v254_v41  ;;  %v260_v44 = vsel %vm255_vm6, %v254_v41, %v252_v42 }
  0xe1   : > { %261 = vst [vmem:[#allocation2 + $0x30] sm:$0xf] %v256_v43  ;;  %262 = vst [vmem:[#allocation2 + $0x38] sm:$0xf] %v260_v44 }
  0xe3   : > { %v282_v45 = vpop.permute.xlu1 %281  ;;  %v280_v46 = vpop.permute.xlu0 %279 }
  0xe4   : > { %v284_v47 = vsel %vm283_vm7, %v280_v46, %v282_v45  ;;  %v288_v48 = vsel %vm283_vm7, %v282_v45, %v280_v46  ;;  %v297_v49 = vld [vmem:[#allocation2 + $0x28] sm:$0xff]  ;;  %v296_v51 = vld [vmem:[#allocation2 + $0x20] sm:$0xff] }
  0xe5   : > { %289 = vst [vmem:[#allocation2 + $0x40] sm:$0xf] %v284_v47  ;;  %290 = vst [vmem:[#allocation2 + $0x48] sm:$0xf] %v288_v48 }
  0xe8   : > { %v299_v50 = vld [vmem:[#allocation2 + $0x38] sm:$0xff]  ;;  %v298_v52 = vld [vmem:[#allocation2 + $0x30] sm:$0xff] }
  0xe9   : > { %v506_v53 = vpack.c.bf16 %v299_v50, %v297_v49  ;;  %v508_v54 = vpack.c.bf16 %v298_v52, %v296_v51 }
  0xeb   : > { %507 = vmatprep.subr.bf16.mxu0 %v506_v53 }
  0xec   : > { %509 = vmatpush1.bf16.msra.mxu0 %v508_v54  ;;  %v301_v55 = vld [vmem:[#allocation2 + $0x48] sm:$0xf]  ;;  %v300_v56 = vld [vmem:[#allocation2 + $0x40] sm:$0xf] }
  0xed   : > { %492 = vmatprep.subr.msk.mxu0 %vm306_vm8, %v301_v55 }
  0xf0   : > { %493 = vmatpush1.msk.msra.mxu0 %vm306_vm8, %v300_v56 }
  0xf1   : > { %494 = vmatmul.mubr.msk.f32.vlgmr.msra.gmra.mrb[0].mxu0 %vm302_vm9, %v291_v57 }
 0x1c4   : > { %v379_v58 = vpop.f32.mrb[0].mxu0 }
 0x1c5   : > { %384 = vst [vmem:[%s172_s4] sm:$0xff] %v379_v58  ;;  %v381_v59 = vpop.f32.mrb[1].mxu0 }
 0x1c6   : > { %385 = vst [vmem:[%s172_s4 + $0x8] sm:$0xff] %v381_v59 }
 0x1c7   : > { %648 = shalt.err (!%p645_p10)
}
 0x1c8   : > { %s649_s22 = scalar_lea.hbm %s894_s21, 256  ;;  %s653_s15 = scalar_lea.hbm %s938_s2, 512 }
 0x1c9   : > { %p650_p1 = scmp.ne.s32.totalorder %s894_s21, %s649_s22  ;;  %p654_p3 = scmp.lt.u32.totalorder %s894_s21, %s938_s2 }
 0x1ca   : > { %p655_p4 = scmp.lt.u32.totalorder %s653_s15, %s649_s22  ;;  %p657_p6 = scmp.lt.u32.totalorder %s649_s22, %s894_s21 }
 0x1cb   : > { %p651_p2 = pnand %p650_p1, %p826_p8 }
 0x1cc   : > { %p656_p11 = por %p655_p4, %p654_p3 }
 0x1cd   : > { %p652_p7 = pneg %p651_p2 }
 0x1ce   : > { %p658_p9 = por %p657_p6, %p656_p11 }
 0x1d0   : > { %p659_p12 = pnand %p658_p9, %p652_p7 }
 0x1d2   : > { %662 = shalt.err (!%p659_p12)
}
 0x1d3   : > { %516 = dma.vmem_to_hbm [thread:$0]  (%p826_p8), %s889_s5, 256, %s894_s21, %s387_s25  }
 0x1d4 PF: > { %s413_s29 = sand.u32 1, %s693_s9   ;;  %p957_p13 = scmp.ne.s32.totalorder %s943_s16, 0 }
 0x1d5   : > { %p958_p0 = scmp.ge.s32.totalorder %s705_s12, 2  ;;  %s414_s30 = scalar_lea.sflag [#allocation5], %s413_s29 }
 0x1d7   : > { %p527_p5 = pnand %p958_p0, %p957_p13 }
 0x1d9   : > { %688 = dma.done.wait (!%p527_p5), %s414_s30, 256  }
 0x1da   : > { %690 = vsyncadd (!%p527_p5), %s414_s30, 4294967040  ;;  %p16_p10 = scmp.ge.s32.totalorder %s782_s20, 4   ;;  %s959_s9 = smov %s697_s10 }
 0x1db   : > { %s960_s10 = smov %s701_s11  ;;  %s961_s11 = smov %s818_s7 }
 0x1dc   : > { %s962_s12 = smov %s782_s20  ;;  %18 = sbr.rel (!%p16_p10) target bundleno = 6 (0x6), region = 77 }
 0x1e3   :  { %419 = vsyncpa [#allocation4], 1 }
 0x1e4   :  { %421 = vsyncpa [#allocation4 + $0x1], 1 }
 0x1e5   :  { %422 = vsyncpa [#allocation7], 1 }
 0x1e6   :  { %423 = vsyncpa [#allocation5], 1 }
 0x1e7   :  { %425 = vsyncpa [#allocation5 + $0x1], 1 }

</bundles_post_ra>
